<compile_context>
chip_gen: v7x
topology: tpu7x:2x2x1
jax: 0.10.0
libtpu: 0.0.40
codegen_flags: <defaults>
</compile_context>

<pallas_src>
import functools

import jax
import jax.numpy as jnp
from jax.experimental import pallas as pl
from jax.experimental.pallas import tpu as pltpu


def _round_up(x, m):
    return ((x + m - 1) // m) * m


def _mlp_shared_dropout_kernel(*refs, apply_mask):
    # One (batch b, seq-tile s) grid step.
    #   x_ref: (TS, n_in_p)   bf16 seq-tile of batch b
    #   w_ref: (n_in_p, n_out_p) bf16, resident every step
    #   b_ref: (1, n_out_p)   f32 lane-padded bias
    #   m_ref: (1, n_out_p)   f32 pre-scaled SharedDropout mask row of batch b
    #   o_ref: (TS, n_out_p)  bf16
    if apply_mask:
        x_ref, w_ref, b_ref, m_ref, o_ref = refs
    else:
        x_ref, w_ref, b_ref, o_ref = refs
        m_ref = None

    # bf16 operands, f32 accumulate on the MXU.
    y = jnp.dot(x_ref[...], w_ref[...], preferred_element_type=jnp.float32)
    y = y + b_ref[...]                      # f32 bias broadcast over rows
    y = jnp.maximum(y, 0.1 * y)             # LeakyReLU(negative_slope=0.1), f32

    if apply_mask:
        # SharedDropout (batch_first=True): one mask per (batch, feature),
        # shared across the whole sequence, already scaled by 1/(1-p).
        y = y * m_ref[...]                  # broadcast over the TS rows

    o_ref[...] = y.astype(o_ref.dtype)      # cast only at the store


def shared_dropout_mask(key, batch, n_features, p):
    """Pre-scaled SharedDropout mask: Bernoulli(1-p)/(1-p) per (batch, feature)."""
    keep = jax.random.bernoulli(key, 1.0 - p, (batch, n_features))
    return keep.astype(jnp.float32) * (1.0 / (1.0 - p))


def prepare_params(weight, bias, *, weight_dtype=jnp.bfloat16, lane=128):
    """One-time parameter prep (outside the per-call hot path).

    weight: (n_out, n_in) PyTorch convention -> transposed, cast to bf16 and
    zero-padded so both n_in and n_out are multiples of 128 (dense lane loads,
    full MXU K dimension, unmasked lane-dense stores).  bias stays f32 for the
    f32 epilogue.
    """
    n_out, n_in = weight.shape
    n_in_p = _round_up(n_in, lane)
    n_out_p = _round_up(n_out, lane)
    w_t = jnp.zeros((n_in_p, n_out_p), weight_dtype)
    w_t = w_t.at[:n_in, :n_out].set(weight.T.astype(weight_dtype))
    b_p = jnp.zeros((1, n_out_p), jnp.float32)
    b_p = b_p.at[:, :n_out].set(bias.astype(jnp.float32)[None, :])
    return w_t, b_p


def mlp_forward(x, w_t, b_p, n_out, *, p=0.5, training=False, dropout_key=None,
                seq_tile=1024):
    """x: (B, S, n_in_p) bf16 (or f32); w_t/b_p from prepare_params().

    training=False (the nn.Module default) -> SharedDropout is the identity.
    training=True requires a fresh `dropout_key` per step (mask is a pure
    function of the key, exactly like torch's per-call bernoulli_).
    """
    B, S, n_in_x = x.shape
    n_in_p, n_out_p = w_t.shape
    if n_in_x != n_in_p:
        # TODO(synk): pad n_in upstream at data-prep time; this per-call pad is
        # an extra full HBM pass for a mem-bound kernel.
        x = jnp.pad(x, ((0, 0), (0, 0), (0, n_in_p - n_in_x)))

    itemsize = jnp.dtype(x.dtype).itemsize

    # Seq tile: biggest multiple-of-8 tile whose double-buffered footprint fits
    # comfortably under v7x's 64 MiB VMEM/TC (v5e/v6e have 128 MiB and simply
    # get more headroom).  No jnp.pad of x: Pallas handles the ragged last tile.
    TS = S if S <= seq_tile else max(8, seq_tile - (seq_tile % 8))

    def footprint(ts):
        x_tile = ts * n_in_p * itemsize
        o_tile = ts * n_out_p * itemsize
        w_res = n_in_p * n_out_p * jnp.dtype(w_t.dtype).itemsize
        small = 4 * n_out_p * 4                    # bias + mask, double-buffered
        return 2 * (x_tile + o_tile + w_res) + small

    while TS > 256 and TS % 8 == 0 and footprint(TS) > 48 * 1024 * 1024:
        TS //= 2
    vmem_limit = int(min(max(2 * footprint(TS), 32 * 1024 * 1024),
                         100 * 1024 * 1024))

    apply_mask = bool(training) and float(p) > 0.0

    args = [x, w_t, b_p]
    in_specs = [
        pl.BlockSpec((None, TS, n_in_p), lambda b, s: (b, s, 0)),
        pl.BlockSpec((n_in_p, n_out_p), lambda b, s: (0, 0)),
        pl.BlockSpec((1, n_out_p), lambda b, s: (0, 0)),
    ]
    if apply_mask:
        if dropout_key is None:
            raise ValueError("training=True with p>0 requires dropout_key")
        mask = shared_dropout_mask(dropout_key, B, n_out_p, float(p))
        args.append(mask)
        in_specs.append(pl.BlockSpec((1, n_out_p), lambda b, s: (b, 0)))

    grid = (B, pl.cdiv(S, TS))
    kernel = functools.partial(_mlp_shared_dropout_kernel, apply_mask=apply_mask)

    flops = 2 * B * S * n_in_p * n_out_p
    bytes_accessed = (x.size * itemsize
                      + w_t.size * jnp.dtype(w_t.dtype).itemsize
                      + b_p.size * 4
                      + (B * n_out_p * 4 if apply_mask else 0)
                      + B * S * n_out_p * itemsize)

    out = pl.pallas_call(
        kernel,
        out_shape=jax.ShapeDtypeStruct((B, S, n_out_p), x.dtype),
        grid=grid,
        in_specs=in_specs,
        out_specs=pl.BlockSpec((None, TS, n_out_p), lambda b, s: (b, s, 0)),
        compiler_params=pltpu.CompilerParams(
            dimension_semantics=("parallel", "parallel"),
            vmem_limit_bytes=vmem_limit,
        ),
        cost_estimate=pl.CostEstimate(flops=flops, transcendentals=0,
                                      bytes_accessed=bytes_accessed),
    )(*args)

    if n_out != n_out_p:
        # TODO(synk): keep the lane-padded layout for downstream consumers to
        # skip this extra HBM slice pass (it is a no-op when n_out % 128 == 0).
        out = out[..., :n_out]
    return out


def orthogonal_init(key, n_out, n_in, dtype=jnp.float32):
    """Deterministic orthogonal init matching nn.init.orthogonal_ semantics."""
    rows, cols = n_out, n_in
    flat = jax.random.normal(key, (max(rows, cols), min(rows, cols)),
                             dtype=jnp.float32)
    q, r = jnp.linalg.qr(flat)
    d = jnp.sign(jnp.diag(r))
    q = q * d[None, :]
    if rows < cols:
        q = q.T
    return q[:rows, :cols].astype(dtype)


if __name__ == "__main__":
    key = jax.random.PRNGKey(0)
    kx, kw, kd = jax.random.split(key, 3)

    # Small, lane-aligned smoke-test shapes (n_in = n_out = 128 -> zero padding,
    # zero wrapper-side HBM passes).
    B, S, n_in, n_out = 2, 8, 128, 128
    x = jax.random.normal(kx, (B, S, n_in), dtype=jnp.float32).astype(jnp.bfloat16)
    weight = orthogonal_init(kw, n_out, n_in)            # (n_out, n_in) f32
    bias = jnp.zeros((n_out,), dtype=jnp.float32)

    w_t, b_p = prepare_params(weight, bias)              # one-time transpose/cast/pad
    n_out_p = w_t.shape[1]

    # f32 reference computed from the SAME bf16-quantized inputs.
    xr = x.astype(jnp.float32)
    wr = w_t.astype(jnp.float32)                         # (n_in_p, n_out_p)
    ref_lin = xr @ wr + b_p                              # (B, S, n_out_p)
    ref_eval = jnp.where(ref_lin > 0, ref_lin, 0.1 * ref_lin)

    # --- eval mode: SharedDropout is the identity (module default) ---
    out_eval = mlp_forward(x, w_t, b_p, n_out, p=0.5, training=False)
    out_eval = jax.block_until_ready(out_eval)
    assert out_eval.shape == (B, S, n_out)
    assert out_eval.dtype == x.dtype
    assert jnp.allclose(out_eval.astype(jnp.float32), ref_eval[..., :n_out],
                        atol=2e-2, rtol=2e-2)

    # --- training mode: Bernoulli(1-p)/(1-p) per (batch, feature), shared over seq ---
    p = 0.5
    out_tr = mlp_forward(x, w_t, b_p, n_out, p=p, training=True, dropout_key=kd)
    out_tr = jax.block_until_ready(out_tr)
    assert out_tr.shape == (B, S, n_out)

    mask = shared_dropout_mask(kd, B, n_out_p, p)        # same mask the wrapper used
    ref_tr = ref_eval * mask[:, None, :]
    out_tr_f32 = out_tr.astype(jnp.float32)
    assert jnp.allclose(out_tr_f32, ref_tr[..., :n_out], atol=2e-2, rtol=2e-2)
    # Dropped (batch, feature) columns are exactly zero at every seq position,
    # i.e. the mask is shared across the sequence axis.
    dropped = mask[:, None, :n_out] == 0.0
    assert bool(jnp.all(jnp.where(dropped, out_tr_f32 == 0.0, True)))

    print("KERNEL_OK")
</pallas_src>

<mosaic_0001>
module attributes {stable_mosaic.version = 11 : i64} {
  func.func @_mlp_shared_dropout_kernel(%arg0: i32, %arg1: i32, %arg2: memref<1x8x128xbf16, #tpu.memory_space<vmem>>, %arg3: memref<128x128xbf16, #tpu.memory_space<vmem>>, %arg4: memref<1x128xf32, #tpu.memory_space<vmem>>, %arg5: memref<1x8x128xbf16, #tpu.memory_space<vmem>>) attributes {dimension_semantics = [#tpu.dimension_semantics<parallel>, #tpu.dimension_semantics<parallel>], iteration_bounds = array<i64: 2, 1>, scalar_prefetch = 0 : i64, scratch_operands = 0 : i64, tpu.core_type = #tpu.core_type<tc>, window_params = [{transform_indices = @transform_0, window_bounds = array<i64: 1, 8, 128>}, {pipeline_mode = #tpu.pipeline_mode<synchronous>, transform_indices = @transform_1, window_bounds = array<i64: 128, 128>}, {pipeline_mode = #tpu.pipeline_mode<synchronous>, transform_indices = @transform_2, window_bounds = array<i64: 1, 128>}, {transform_indices = @transform_3, window_bounds = array<i64: 1, 8, 128>}]} {
    %c0 = arith.constant 0 : index
    %c0_0 = arith.constant 0 : index
    %c0_1 = arith.constant 0 : index
    %0 = vector.load %arg2[%c0, %c0_0, %c0_1] : memref<1x8x128xbf16, #tpu.memory_space<vmem>>, vector<1x8x128xbf16>
    %1 = vector.shape_cast %0 : vector<1x8x128xbf16> to vector<8x128xbf16>
    %c0_2 = arith.constant 0 : index
    %c0_3 = arith.constant 0 : index
    %2 = vector.load %arg3[%c0_2, %c0_3] : memref<128x128xbf16, #tpu.memory_space<vmem>>, vector<128x128xbf16>
    %cst = arith.constant dense<0.000000e+00> : vector<8x128xf32>
    %3 = tpu.matmul %1, %2, %cst {dimension_numbers = #tpu.dot_dimension_numbers<[1], [0], [0], [1], [0, 0, 1, 1], [], []>} : vector<8x128xbf16>, vector<128x128xbf16>, vector<8x128xf32> -> vector<8x128xf32>
    %c0_4 = arith.constant 0 : index
    %c0_5 = arith.constant 0 : index
    %4 = vector.load %arg4[%c0_4, %c0_5] : memref<1x128xf32, #tpu.memory_space<vmem>>, vector<1x128xf32>
    %5 = vector.broadcast %4 : vector<1x128xf32> to vector<8x128xf32>
    %6 = arith.addf %3, %5 : vector<8x128xf32>
    %cst_6 = arith.constant 1.000000e-01 : f32
    %7 = vector.broadcast %cst_6 : f32 to vector<8x128xf32>
    %8 = arith.mulf %7, %6 : vector<8x128xf32>
    %9 = arith.maximumf %6, %8 : vector<8x128xf32>
    %10 = arith.truncf %9 : vector<8x128xf32> to vector<8x128xbf16>
    %c0_7 = arith.constant 0 : index
    %c0_8 = arith.constant 0 : index
    %c0_9 = arith.constant 0 : index
    %11 = vector.load %arg5[%c0_7, %c0_8, %c0_9] : memref<1x8x128xbf16, #tpu.memory_space<vmem>>, vector<1x8x128xbf16>
    %12 = vector.shape_cast %11 : vector<1x8x128xbf16> to vector<8x128xbf16>
    %13 = vector.shape_cast %10 : vector<8x128xbf16> to vector<1x8x128xbf16>
    tpu.vector_store %arg5[%c0_7, %c0_8, %c0_9], %13 {strides = array<i32>} : memref<1x8x128xbf16, #tpu.memory_space<vmem>>, vector<1x8x128xbf16>,
    return
  }
  func.func @transform_0(%arg0: i32, %arg1: i32) -> (i32, i32, i32) {
    %c0_i32 = arith.constant 0 : i32
    %c0_i32_0 = arith.constant 0 : i32
    return %arg0, %arg1, %c0_i32 : i32, i32, i32
  }
  func.func @transform_1(%arg0: i32, %arg1: i32) -> (i32, i32) {
    %c0_i32 = arith.constant 0 : i32
    %c0_i32_0 = arith.constant 0 : i32
    %c0_i32_1 = arith.constant 0 : i32
    return %c0_i32, %c0_i32_0 : i32, i32
  }
  func.func @transform_2(%arg0: i32, %arg1: i32) -> (i32, i32) {
    %c0_i32 = arith.constant 0 : i32
    %c0_i32_0 = arith.constant 0 : i32
    %c0_i32_1 = arith.constant 0 : i32
    return %c0_i32, %c0_i32_0 : i32, i32
  }
  func.func @transform_3(%arg0: i32, %arg1: i32) -> (i32, i32, i32) {
    %c0_i32 = arith.constant 0 : i32
    %c0_i32_0 = arith.constant 0 : i32
    return %arg0, %arg1, %c0_i32 : i32, i32, i32
  }
}

</mosaic_0001>

<bundles_post_ra>
// kernel: tpu_custom_call.1
= control target key start
LH: loop header
LB: loop body
LE: loop exit
PB: predicated region body
PF: predicated region fallthrough
CT: control target
= control target key end

     0   :  { %8 = vsyncpa [#allocation3], 0  ;;  %s975_s0 = inlined_call_operand.hbm [shape: bf16[2,8,128], index: 0, kind: input, shape index: {}]   ;;  %s976_s1 = inlined_call_operand.hbm [shape: bf16[128,128], index: 1, kind: input, shape index: {}]   ;;  %s977_s2 = inlined_call_operand.vmem [shape: f32[1,128], index: 2, kind: input, shape index: {}]   ;;  %s978_s3 = inlined_call_operand.hbm [shape: bf16[2,8,128], index: 3, kind: output, shape index: {}]  }
   0x1   :  { %10 = vsyncpa [#allocation3 + $0x1], 0 }
   0x2   :  { %11 = vsyncpa [#allocation6], 0 }
   0x3   :  { %12 = vsyncpa [#allocation4], 0 }
   0x4   :  { %14 = vsyncpa [#allocation4 + $0x1], 0  ;;  %s751_s12 = smov 0   ;;  %s753_s13 = smov 0  }
   0x5   :  { %s755_s14 = smov 0   ;;  %s757_s15 = smov 0  }
   0x6   :  { %s759_s16 = smov 0   ;;  %s761_s17 = smov 0  }
   0x7 LB: > { %s440_s18 = sadd.s32 4294967295, %s722_s17   ;;  %s441_s19 = sadd.s32 4294967294, %s722_s17   ;;  %s722_s17 = sphi %s761_s17, %s20_s17   ;;  %s718_s16 = sphi %s759_s16, %s1002_s16   ;;  %s714_s15 = sphi %s757_s15, %s1001_s15   ;;  %s710_s14 = sphi %s755_s14, %s1000_s14   ;;  %s706_s13 = sphi %s753_s13, %s999_s13   ;;  %s702_s12 = sphi %s751_s12, %s998_s12  }
   0x8   : > { %p54_p0 = scmp.ne.s32.totalorder %s706_s13, %s702_s12  ;;  %p785_p1 = scmp.eq.s32.totalorder %s440_s18, 0 }
   0x9   : > { %p789_p2 = scmp.eq.s32.totalorder %s440_s18, 1  ;;  %p128_p3 = scmp.eq.s32.totalorder %s441_s19, 1 }
   0xa   : > { %s983_s20 = scalar_select %p785_p1, 1, 0 }
   0xb   : > { %s984_s21 = scalar_select %p789_p2, 1, 0 }
   0xc   : > { %p795_p4 = por %p785_p1, %p54_p0  ;;  %p442_p5 = scmp.ge.s32.totalorder %s722_s17, 1 }
   0xd   : > { %p800_p6 = por %p128_p3, %p54_p0  ;;  %p135_p7 = scmp.lt.s32.totalorder %s722_s17, 3 }
   0xe   : > { %s985_s22 = scalar_select %p795_p4, 1, 0 }
   0xf   : > { %s986_s23 = scalar_select %p800_p6, 1, 0 }
  0x10   : > { %p805_p8 = pnand %p442_p5, %p135_p7  ;;  %s724_s25 = smov [#allocation5]  }
  0x11   : > { %s147_s26 = sshll.u32 %s724_s25, 4  ;;  %s32_s28 = sadd.s32 1, %s718_s16  ;;  %s148_s26 = int_to_ptr.vmem [resolvable:$true] %s147_s26 }
  0x12   : > { %s987_s24 = scalar_select %p805_p8, 1, 0 }
  0x13   : > { %p501_p9 = pneg %p805_p8  ;;  %s578_s4 = scalar_lea.hbm %s976_s1, 1024 }
  0x14   : > { %p579_p12 = scmp.ne.s32.totalorder %s976_s1, %s578_s4  ;;  %p585_p5 = scmp.lt.u32.totalorder %s578_s4, %s976_s1 }
  0x15   : > { %p814_p11 = pnand %p501_p9, %p785_p1 }
  0x17   : > { %p580_p13 = pneg %p814_p11 }
  0x19   : > { %p581_p0 = pnand %p580_p13, %p579_p12 }
  0x1b   : > { %p582_p3 = pneg %p581_p0 }
  0x1d   : > { %p587_p7 = pnand %p585_p5, %p582_p3 }
  0x1f   : > { %590 = shalt.err (!%p587_p7)
}
  0x20   : > { %s591_s9 = scalar_lea.vmem %s148_s26, 1024  ;;  %p599_p1 = scmp.lt.s32.totalorder %s148_s26, %s148_s26 }
  0x21   : > { %p592_p9 = scmp.ne.s32.totalorder %s148_s26, %s591_s9  ;;  %p600_p4 = scmp.lt.s32.totalorder %s591_s9, %s591_s9 }
  0x23   : > { %p594_p10 = pnand %p592_p9, %p580_p13  ;;  %p601_p8 = por %p600_p4, %p599_p1 }
  0x25   : > { %p595_p6 = pneg %p594_p10 }
  0x27   : > { %p602_p2 = pnand %p601_p8, %p595_p6 }
  0x29   : > { %605 = shalt.err (!%p602_p2)
}
  0x2a   : > { %s725_s10 = smov 64   ;;  %s726_s11 = smov 4  }
  0x2b   : > { %504 = dma.hbm_to_vmem [thread:$0]  (!%p814_p11), %s976_s1, 1024, %s148_s26, [#allocation6], %s725_s10, %s725_s10, %s726_s11  }
  0x2c   : > { %p34_p1 = scmp.ge.s32.totalorder %s32_s28, 2  ;;  %s41_s25 = sadd.s32 1, %s710_s14 }
  0x2d   : > { %p48_p2 = scmp.ne.s32.totalorder %s710_s14, %s706_s13  ;;  %p49_p4 = scmp.eq.s32.totalorder %s722_s17, 0 }
  0x2e   : > { %s1004_s28 = smov (%p34_p1, %s32_s28), 0  ;;  %p990_p8 = scmp.ne.s32.totalorder %s984_s21, 0 }
  0x2f   : > { %p841_p6 = por %p49_p4, %p48_p2  ;;  %s36_s27 = ssub.s32 %s718_s16, %s1004_s28 }
  0x30   : > { %p847_p10 = por %p990_p8, %p48_p2  ;;  %p514_p12 = scmp.lt.s32.totalorder %s722_s17, 2 }
  0x31   : > { %p39_p11 = scmp.eq.s32.totalorder %s36_s27, 0  ;;  %s164_s26 = sand.u32 1, %s710_s14  }
  0x32   : > { %s445_s4 = sshll.u32 %s164_s26, 2  ;;  %s446_s6 = sshll.u32 %s718_s16, 6 }
  0x33   : > { %s856_s5 = scalar_select %p39_p11, %s710_s14, %s41_s25  }
  0x34   : > { %s862_s9 = scalar_lea.hbm %s975_s0, %s446_s6  ;;  %s168_s21 = scalar_lea.vmem [#allocation2], %s445_s4 }
  0x35   : > { %s176_s10 = sshll.u32 %s168_s21, 4  ;;  %p868_p13 = pnand %p514_p12, %p841_p6  ;;  %s864_s10 = int_to_ptr.vmem [resolvable:$true] %s176_s10 }
  0x36   : > { %s165_s18 = scalar_lea.sflag [#allocation3], %s164_s26  ;;  %s606_s19 = scalar_lea.hbm %s862_s9, 64 }
  0x37   : > { %p607_p0 = scmp.ne.s32.totalorder %s862_s9, %s606_s19  ;;  %p608_p3 = pneg %p868_p13 }
  0x38   : > { %s611_s4 = scalar_lea.hbm %s975_s0, 128  ;;  %p612_p9 = scmp.lt.u32.totalorder %s862_s9, %s975_s0 }
  0x39   : > { %p609_p5 = pnand %p608_p3, %p607_p0  ;;  %p613_p1 = scmp.lt.u32.totalorder %s611_s4, %s606_s19 }
  0x3a   : > { %p615_p4 = scmp.lt.u32.totalorder %s606_s19, %s862_s9 }
  0x3b   : > { %p610_p7 = pneg %p609_p5  ;;  %p614_p2 = por %p613_p1, %p612_p9 }
  0x3d   : > { %p616_p6 = por %p615_p4, %p614_p2 }
  0x3f   : > { %p617_p8 = pnand %p616_p6, %p610_p7 }
  0x41   : > { %620 = shalt.err (!%p617_p8)
}
  0x42   : > { %s621_s26 = scalar_lea.vmem %s864_s10, 64  ;;  %s727_s7 = smov [#allocation2]  }
  0x43   : > { %p622_p12 = scmp.ne.s32.totalorder %s864_s10, %s621_s26  ;;  %s626_s8 = sshll.u32 %s727_s7, 4  ;;  %s627_s8 = int_to_ptr.vmem [resolvable:$false] %s626_s8 }
  0x44   : > { %s628_s21 = scalar_lea.vmem %s627_s8, 128  ;;  %p629_p5 = scmp.lt.s32.totalorder %s864_s10, %s627_s8 }
  0x45   : > { %p624_p11 = pnand %p622_p12, %p608_p3  ;;  %p630_p9 = scmp.lt.s32.totalorder %s628_s21, %s621_s26 }
  0x47   : > { %p625_p0 = pneg %p624_p11  ;;  %p631_p1 = por %p630_p9, %p629_p5 }
  0x49   : > { %p632_p2 = pnand %p631_p1, %p625_p0 }
  0x4b   : > { %635 = shalt.err (!%p632_p2)
}
  0x4c   : > { %508 = dma.hbm_to_vmem [thread:$0]  (!%p868_p13), %s862_s9, 64, %s864_s10, %s165_s18  }
  0x4d   : > { %p993_p7 = scmp.ne.s32.totalorder %s987_s24, 0 }
  0x4e   : > { %s900_s19 = sand.u32 (!%p993_p7), 1, %s706_s13   ;;  %p994_p3 = scmp.ne.s32.totalorder (!%p993_p7), %s985_s22, 0 }
  0x4f   : > { %185 = sbr.rel (%p993_p7) target bundleno = 357 (0x165), region = 32  ;;  %s448_s25 = sshll.u32 (!%p993_p7), %s900_s19, 2 }
  0x50   : > { %s188_s27 = scalar_lea.sflag (!%p993_p7), [#allocation3], %s900_s19  ;;  %s906_s4 = scalar_lea.vmem (!%p993_p7), [#allocation2], %s448_s25 }
  0x56   : > { %689 = dma.done.wait (%p994_p3), %s188_s27, 64  }
  0x57   : > { %691 = vsyncadd (%p994_p3), %s188_s27, 4294967232  ;;  %p995_p13 = scmp.ne.s32.totalorder %s983_s20, 0 }
  0x59   : > { %693 = dma.done.wait (%p995_p13), [#allocation6], 1024  }
  0x5a   : > { %695 = vsyncadd (%p995_p13), [#allocation6], 4294966272  ;;  %v728_v0 = vmov 0.0   ;;  %vm729_vm0 = vmmov 0   ;;  %v570_v1 = vld [vmem:[#allocation5] sm:$0xff]   ;;  %v571_v2 = vld [vmem:[#allocation5 + $0x8] sm:$0xff]  }
  0x5b   : > { %473 = vmatprep.subr.bf16.mxu0 %v728_v0  ;;  %489 = vmatprep.mubr.msk.bf16.mxu0 %vm729_vm0, %v728_v0  ;;  %v572_v3 = vld [vmem:[#allocation5 + $0x10] sm:$0xff]   ;;  %v573_v4 = vld [vmem:[#allocation5 + $0x18] sm:$0xff]   ;;  %v574_v5 = vld [vmem:[#allocation5 + $0x20] sm:$0xff]   ;;  %s461_s24 = sshll.u32 %s714_s15, 6  ;;  %s217_s9 = scalar_lea.vmem [#allocation7], %s448_s25 }
  0x5c   : > { %474 = vmatpush3.bf16.msra.mxu0 %v570_v1  ;;  %v575_v6 = vld [vmem:[#allocation5 + $0x28] sm:$0xff]   ;;  %v576_v7 = vld [vmem:[#allocation5 + $0x30] sm:$0xff]   ;;  %v577_v8 = vld [vmem:[#allocation5 + $0x38] sm:$0xff]   ;;  %s350_s10 = sshll.u32 %s217_s9, 4  ;;  %s926_s29 = scalar_lea.hbm %s978_s3, %s461_s24  ;;  %s928_s10 = int_to_ptr.vmem [resolvable:$true] %s350_s10 }
  0x5d   : > { %475 = vmatprep.subr.bf16.mxu0 %v728_v0  ;;  %v219_v9 = vld [vmem:[%s906_s4] sm:$0xf]  ;;  %s336_s6 = scalar_lea.sflag [#allocation4], %s900_s19  ;;  %s636_s26 = scalar_lea.vmem %s928_s10, 64 }
  0x5e   : > { %v451_v10 = vld [vmem:[%s977_s2] ss:$0 sm:$0xff]  ;;  %p637_p4 = scmp.ne.s32.totalorder %s928_s10, %s636_s26  ;;  %s730_s15 = smov [#allocation7]  }
  0x5f   : > { %s640_s7 = sshll.u32 %s730_s15, 4  ;;  %s641_s7 = int_to_ptr.vmem [resolvable:$false] %s640_s7 }
  0x60   : > { %476 = vmatpush3.bf16.msra.mxu0 %v571_v2  ;;  %p638_p6 = pnand %p637_p4, %p847_p10  ;;  %s642_s8 = scalar_lea.vmem %s641_s7, 128 }
  0x61   : > { %477 = vmatprep.subr.bf16.mxu0 %v728_v0  ;;  %p643_p12 = scmp.lt.s32.totalorder %s928_s10, %s641_s7  ;;  %p644_p11 = scmp.lt.s32.totalorder %s642_s8, %s636_s26 }
  0x62   : > { %p639_p8 = pneg %p638_p6 }
  0x63   : > { %p645_p0 = por %p644_p11, %p643_p12 }
  0x64   : > { %478 = vmatpush3.bf16.msra.mxu0 %v572_v3 }
  0x65   : > { %479 = vmatprep.subr.bf16.mxu0 %v728_v0  ;;  %p646_p5 = pnand %p645_p0, %p639_p8 }
  0x68   : > { %480 = vmatpush3.bf16.msra.mxu0 %v573_v4 }
  0x69   : > { %481 = vmatprep.subr.bf16.mxu0 %v728_v0 }
  0x6c   : > { %482 = vmatpush3.bf16.msra.mxu0 %v574_v5 }
  0x6d   : > { %483 = vmatprep.subr.bf16.mxu0 %v728_v0 }
  0x70   : > { %484 = vmatpush3.bf16.msra.mxu0 %v575_v6 }
  0x71   : > { %485 = vmatprep.subr.bf16.mxu0 %v728_v0 }
  0x74   : > { %486 = vmatpush3.bf16.msra.mxu0 %v576_v7 }
  0x75   : > { %487 = vmatprep.subr.bf16.mxu0 %v728_v0 }
  0x78   : > { %488 = vmatpush3.bf16.msra.mxu0 %v577_v8 }
  0x7b   : > { %490 = vmatmul.mubr.bf16.vlgmr.msra.gmra.mrb[0].mxu0 %v219_v9 }
 0x14e   : > { %v325_v11 = vpop.f32.mrb[0].mxu0 }
 0x14f   : > { %v326_v12 = vadd.f32 %v451_v10, %v325_v11  ;;  %v491_v13 = vpop.f32.mrb[1].mxu0 }
 0x150   : > { %v328_v14 = vpop.f32.mrb[2].mxu0 }
 0x151   : > { %v331_v15 = vmul.f32 0.1, %v326_v12  ;;  %v492_v16 = vpop.f32.mrb[3].mxu0 }
 0x153   : > { %v332_v17 = vmax.f32 %v326_v12, %v331_v15 }
 0x155   : > { %v333_v18 = vpack.c.bf16 %v332_v17, %v332_v17 }
 0x157   : > { %334 = vst [vmem:[%s217_s9] sm:$0xf] %v333_v18 }
 0x158   : > { %649 = shalt.err (!%p646_p5)
}
 0x159   : > { %s650_s21 = scalar_lea.hbm %s926_s29, 64  ;;  %s654_s27 = scalar_lea.hbm %s978_s3, 128 }
 0x15a   : > { %p651_p9 = scmp.ne.s32.totalorder %s926_s29, %s650_s21  ;;  %p655_p7 = scmp.lt.u32.totalorder %s926_s29, %s978_s3 }
 0x15b   : > { %p656_p3 = scmp.lt.u32.totalorder %s654_s27, %s650_s21  ;;  %p658_p4 = scmp.lt.u32.totalorder %s650_s21, %s926_s29 }
 0x15c   : > { %p652_p1 = pnand %p651_p9, %p847_p10 }
 0x15d   : > { %p657_p13 = por %p656_p3, %p655_p7 }
 0x15e   : > { %p653_p2 = pneg %p652_p1 }
 0x15f   : > { %p659_p6 = por %p658_p4, %p657_p13 }
 0x161   : > { %p660_p8 = pnand %p659_p6, %p653_p2 }
 0x163   : > { %663 = shalt.err (!%p660_p8)
}
 0x164   : > { %499 = dma.vmem_to_hbm [thread:$0]  (%p847_p10), %s928_s10, 64, %s926_s29, %s336_s6  }
 0x165 PF: > { %s362_s22 = sand.u32 1, %s702_s12   ;;  %p996_p12 = scmp.ne.s32.totalorder %s986_s23, 0 }
 0x166   : > { %p997_p11 = scmp.ge.s32.totalorder %s722_s17, 2  ;;  %s363_s24 = scalar_lea.sflag [#allocation4], %s362_s22 }
 0x168   : > { %p510_p0 = pnand %p997_p11, %p996_p12 }
 0x16a   : > { %697 = dma.done.wait (!%p510_p0), %s363_s24, 64  }
 0x16b   : > { %699 = vsyncadd (!%p510_p0), %s363_s24, 4294967232  ;;  %s20_s17 = sadd.s32 1, %s722_s17   ;;  %s998_s12 = smov %s706_s13 }
 0x16c   : > { %p17_p5 = scmp.ge.s32.totalorder %s20_s17, 4   ;;  %s999_s13 = smov %s710_s14 }
 0x16d   : > { %s1000_s14 = smov %s856_s5  ;;  %s1001_s15 = smov %s718_s16 }
 0x16e   : > { %s1002_s16 = smov %s1004_s28  ;;  %19 = sbr.rel (!%p17_p5) target bundleno = 7 (0x7), region = 81 }
 0x175   :  { %368 = vsyncpa [#allocation3], 1 }
 0x176   :  { %370 = vsyncpa [#allocation3 + $0x1], 1 }
 0x177   :  { %371 = vsyncpa [#allocation6], 1 }
 0x178   :  { %372 = vsyncpa [#allocation4], 1 }
 0x179   :  { %374 = vsyncpa [#allocation4 + $0x1], 1 }

</bundles_post_ra>
